<compile_context>
chip_gen: v5e
topology: v5e:2x2
jax: 0.10.0
libtpu: 0.0.40
codegen_flags: <defaults>
</compile_context>

<pallas_src>
import functools
import math

import numpy as np
import jax
import jax.numpy as jnp
from jax.experimental import pallas as pl
from jax.experimental.pallas import tpu as pltpu


# x_mark feature order (per TemporalEmbedding.forward): month, day, weekday, hour[, minute]
_TEMPORAL_SIZES = {'h': (13, 32, 7, 24), 't': (13, 32, 7, 24, 4)}
_FIELD_BITS = {'h': (4, 5, 3, 5), 't': (4, 5, 3, 5, 2)}   # bit widths for packing


def _field_meta(freq):
    """Static per-feature (bit_shift, bit_width, table_row_offset)."""
    sizes, bits = _TEMPORAL_SIZES[freq], _FIELD_BITS[freq]
    meta, s, o = [], 0, 0
    for b, n in zip(bits, sizes):
        meta.append((s, b, o))
        s += b
        o += n
    return tuple(meta)


# ---------------------------------------------------------------------------
# Kernel
# ---------------------------------------------------------------------------
def _data_embedding_kernel(x_ref, halo_ref, *rest,
                           tile_l, seq_len, field_meta, has_mark):
    """One (batch, seq-tile) block of DataEmbedding.forward.

    Every output row depends only on its own x row, its +/-1 circular neighbours
    (supplied in-tile or via the 2-row halo) and its own x_mark row, so partial
    last tiles are safe: garbage padded rows only produce garbage rows that
    Pallas discards on the out-of-bounds writeback.
    """
    if has_mark:
        marks_ref, w_ref, table_ref, inv_freq_ref, phase_ref, o_ref = rest
    else:
        w_ref, inv_freq_ref, phase_ref, o_ref = rest

    d_model = o_ref.shape[2]
    c_in = x_ref.shape[2]
    row0 = pl.program_id(1) * tile_l                    # global start row of this tile

    # ---- value embedding: circular Conv1d(k=3) as three accumulated MXU dots ----
    x_cur = x_ref[0]                                    # (tile_l, c_in)
    halo = halo_ref[0, 0]                               # (2, c_in): [x[start-1], x[end]]
    row = jax.lax.broadcasted_iota(jnp.int32, (tile_l, c_in), 0)

    # x_prev[l] = x[l-1]; row 0 comes from the halo (previous tile / circular wrap).
    x_prev = jnp.where(row == 0, halo[0:1, :], pltpu.roll(x_cur, 1, axis=0))
    # x_next[l] = x[l+1]; the last *valid* row (partial-tile aware) comes from halo.
    last_valid = jnp.minimum(tile_l, seq_len - row0) - 1
    x_next = jnp.where(row == last_valid, halo[1:2, :],
                       pltpu.roll(x_cur, tile_l - 1, axis=0))

    acc = jnp.dot(x_cur, w_ref[1], preferred_element_type=jnp.float32)
    acc = acc + jnp.dot(x_prev, w_ref[0], preferred_element_type=jnp.float32)
    acc = acc + jnp.dot(x_next, w_ref[2], preferred_element_type=jnp.float32)

    # ---- positional embedding: one sin per element -------------------------------
    inv_freq = inv_freq_ref[...]                         # (1, d_model)
    off = row0.astype(jnp.float32) * inv_freq + phase_ref[...]     # (1, d_model)
    pos = jax.lax.broadcasted_iota(jnp.int32, (tile_l, d_model), 0).astype(jnp.float32)
    acc = acc + jnp.sin(pos * inv_freq + off)

    # ---- temporal embedding: multi-hot @ concatenated fixed tables ---------------
    if has_mark:
        packed = marks_ref[0]                            # (tile_l, 1) int32, packed fields
        table_rows = table_ref.shape[0]
        col = jax.lax.broadcasted_iota(jnp.int32, (tile_l, table_rows), 1)
        hit = None
        for shift, width, offset in field_meta:          # unrolled, <= 5 features
            idx = ((packed >> shift) & ((1 << width) - 1)) + offset
            h = col == idx
            hit = h if hit is None else (hit | h)        # disjoint ranges -> OR is exact
        mh = hit.astype(jnp.float32)                     # single convert at the end
        acc = acc + jnp.dot(mh, table_ref[...], preferred_element_type=jnp.float32)

    o_ref[0] = acc.astype(o_ref.dtype)


# ---------------------------------------------------------------------------
# Parameter / constant construction (host-side, tiny)
# ---------------------------------------------------------------------------
def _fixed_sinusoid_table(n_rows: int, d_model: int) -> jax.Array:
    """PyTorch FixedEmbedding / PositionalEmbedding table (literal sin/cos)."""
    pos = jnp.arange(n_rows, dtype=jnp.float32)[:, None]
    div = jnp.exp(jnp.arange(0, d_model, 2, dtype=jnp.float32)
                  * (-math.log(10000.0) / d_model))
    tbl = jnp.zeros((n_rows, d_model), jnp.float32)
    tbl = tbl.at[:, 0::2].set(jnp.sin(pos * div))
    tbl = tbl.at[:, 1::2].set(jnp.cos(pos * div))
    return tbl


def init_data_embedding_params(key, c_in: int, d_model: int, freq: str = 'h'):
    assert d_model % 2 == 0, "d_model must be even (as in the PyTorch module)"
    sizes = _TEMPORAL_SIZES[freq]

    # TokenEmbedding Conv1d weight, torch layout (d_model, c_in, 3);
    # kaiming-normal-like init (exact init does not change forward semantics).
    fan_in = c_in * 3
    conv_w = (jax.random.normal(key, (d_model, c_in, 3), jnp.float32)
              * math.sqrt(2.0 / fan_in))
    # tap k multiplies x[l + k - 1]  ->  stack as (3, c_in, d_model)
    w_stack = jnp.transpose(conv_w, (2, 1, 0))

    # Concatenated fixed temporal tables, zero-padded to 128 rows (lane-dense
    # multi-hot; padded rows are never selected).
    table = jnp.concatenate([_fixed_sinusoid_table(n, d_model) for n in sizes], axis=0)
    table = jnp.concatenate(
        [table, jnp.zeros((128 - table.shape[0], d_model), jnp.float32)], axis=0)

    # Per-column PE constants: pe[l, d] = sin(l * inv_freq[d] + phase[d]).
    half = jnp.exp(jnp.arange(0, d_model, 2, dtype=jnp.float32)
                   * (-math.log(10000.0) / d_model))
    inv_freq = jnp.repeat(half, 2)[None, :]                              # (1, d_model)
    phase = jnp.tile(jnp.asarray([0.0, math.pi / 2.0], jnp.float32),
                     d_model // 2)[None, :]                              # (1, d_model)

    return dict(conv_w=conv_w, w_stack=w_stack, table=table,
                inv_freq=inv_freq, phase=phase)


# ---------------------------------------------------------------------------
# Wrapper
# ---------------------------------------------------------------------------
def _tile_cap(d_model: int, vmem_budget_bytes: int) -> int:
    """Largest seq-tile (rows) fitting the budget: double-buffered blocks
    (out + lane-padded x + lane-padded marks) + ~4 (tile_l, d_model) f32
    temporaries + the (tile_l, 128) multi-hot."""
    lane = 128
    row_bytes = 4 * (6 * d_model + 5 * lane)
    cap = (vmem_budget_bytes // row_bytes) // 8 * 8
    return int(max(8, min(4096, cap)))


def data_embedding(params, x, x_mark=None, freq: str = 'h'):
    """Fused DataEmbedding.forward.  x: (B, L, c_in) f32, x_mark: (B, L, n_feat) int."""
    B, L, c_in = x.shape
    w_stack = params['w_stack']
    d_model = w_stack.shape[2]
    has_mark = x_mark is not None
    x = x.astype(jnp.float32)

    # Generation-aware VMEM budget (v5e/v6e: 128 MiB physical, v7x: 64 MiB).
    phys_vmem = 64 * 1024 * 1024
    try:
        phys_vmem = int(getattr(pltpu.get_tpu_info(), 'vmem_capacity_bytes', phys_vmem))
    except Exception:
        pass
    vmem_limit = min((phys_vmem * 3) // 4, 96 * 1024 * 1024)
    tile_budget = min(24 * 1024 * 1024, vmem_limit // 2)

    cap = _tile_cap(d_model, tile_budget)
    tile_l = L if L <= cap else cap
    num_tiles = pl.cdiv(L, tile_l)
    if B * num_tiles < 2 and L > 8:
        # Guarantee >= 2 grid steps so v7x's second TensorCore gets work.
        tile_l = min(tile_l, ((L + 1) // 2 + 7) // 8 * 8)
        num_tiles = pl.cdiv(L, tile_l)

    # Per-tile circular halo rows: x[(start-1) % L] and x[(start+rows_valid) % L].
    starts = np.arange(num_tiles) * tile_l
    rows_valid = np.minimum(tile_l, L - starts)
    halo_idx = np.stack([(starts - 1) % L, (starts + rows_valid) % L], axis=1).reshape(-1)
    halo = jnp.take(x, jnp.asarray(halo_idx, jnp.int32), axis=1)
    halo = halo.reshape(B, num_tiles, 2, c_in)                       # tiny

    field_meta = _field_meta(freq)
    inputs = [x, halo]
    in_specs = [
        pl.BlockSpec((1, tile_l, c_in), lambda b, i: (b, i, 0)),
        pl.BlockSpec((1, 1, 2, c_in), lambda b, i: (b, i, 0, 0)),
    ]
    if has_mark:
        # Pack all calendar fields into one int32 per row -> 4x denser marks DMA.
        packed = jnp.zeros((B, L), jnp.int32)
        for f, (shift, _width, _off) in enumerate(field_meta):
            packed = packed | (x_mark[..., f].astype(jnp.int32) << shift)
        inputs.append(packed[..., None])                             # (B, L, 1)
        in_specs.append(pl.BlockSpec((1, tile_l, 1), lambda b, i: (b, i, 0)))

    inputs.append(w_stack)
    in_specs.append(pl.BlockSpec(w_stack.shape, lambda b, i: (0, 0, 0)))
    if has_mark:
        inputs.append(params['table'])
        in_specs.append(pl.BlockSpec(params['table'].shape, lambda b, i: (0, 0)))
    inputs += [params['inv_freq'], params['phase']]
    in_specs += [pl.BlockSpec((1, d_model), lambda b, i: (0, 0)),
                 pl.BlockSpec((1, d_model), lambda b, i: (0, 0))]

    kernel = functools.partial(_data_embedding_kernel, tile_l=tile_l, seq_len=L,
                               field_meta=field_meta, has_mark=has_mark)

    out = pl.pallas_call(
        kernel,
        out_shape=jax.ShapeDtypeStruct((B, L, d_model), jnp.float32),
        grid_spec=pltpu.PrefetchScalarGridSpec(
            num_scalar_prefetch=0,
            grid=(B, num_tiles),
            in_specs=in_specs,
            out_specs=pl.BlockSpec((1, tile_l, d_model), lambda b, i: (b, i, 0)),
        ),
        compiler_params=pltpu.CompilerParams(
            dimension_semantics=("parallel", "parallel"),
            vmem_limit_bytes=int(vmem_limit)),
    )(*inputs)
    # TODO(synk): nn.Dropout(p=0.1) is treated as identity (eval-mode forward);
    # training-mode dropout would use pltpu.prng_seed / pltpu.prng_random_bits.
    return out


# ---------------------------------------------------------------------------
# Pure-JAX reference (literal PyTorch semantics) + demo
# ---------------------------------------------------------------------------
def _reference_data_embedding(params, x, x_mark, freq='h'):
    B, L, _ = x.shape
    conv_w = params['conv_w']
    d_model = conv_w.shape[0]
    # TokenEmbedding: Conv1d(k=3, circular padding, no bias)
    val = (jnp.einsum('blc,oc->blo', jnp.roll(x, 1, axis=1), conv_w[:, :, 0])
           + jnp.einsum('blc,oc->blo', x, conv_w[:, :, 1])
           + jnp.einsum('blc,oc->blo', jnp.roll(x, -1, axis=1), conv_w[:, :, 2]))
    # PositionalEmbedding (literal sin / cos)
    pe = _fixed_sinusoid_table(L, d_model)[None]
    # TemporalEmbedding (fixed sinusoidal tables)
    temp = jnp.zeros((B, L, d_model), jnp.float32)
    if x_mark is not None:
        xm = x_mark.astype(jnp.int32)
        for f, n in enumerate(_TEMPORAL_SIZES[freq]):
            temp = temp + _fixed_sinusoid_table(n, d_model)[xm[:, :, f]]
    return val + temp + pe


if __name__ == "__main__":
    batch, seq_len, c_in, d_model, freq = 2, 16, 7, 128, 'h'

    key = jax.random.PRNGKey(0)
    k_w, k_x, k_m0, k_m1, k_m2, k_m3 = jax.random.split(key, 6)

    params = init_data_embedding_params(k_w, c_in, d_model, freq=freq)
    x = jax.random.normal(k_x, (batch, seq_len, c_in), jnp.float32)
    x_mark = jnp.stack([
        jax.random.randint(k_m0, (batch, seq_len), 0, 13),   # month
        jax.random.randint(k_m1, (batch, seq_len), 0, 32),   # day
        jax.random.randint(k_m2, (batch, seq_len), 0, 7),    # weekday
        jax.random.randint(k_m3, (batch, seq_len), 0, 24),   # hour
    ], axis=-1).astype(jnp.int32)

    # Full path (value + temporal + positional)
    out = jax.block_until_ready(data_embedding(params, x, x_mark, freq=freq))
    ref = _reference_data_embedding(params, x, x_mark, freq=freq)
    assert out.shape == (batch, seq_len, d_model), out.shape
    assert out.dtype == jnp.float32
    err = float(jnp.max(jnp.abs(out - ref)))
    assert jnp.allclose(out, ref, atol=1e-4, rtol=1e-4), f"mismatch vs reference: {err}"

    # Specialized no-x_mark path (value + positional only)
    out2 = jax.block_until_ready(data_embedding(params, x, None, freq=freq))
    ref2 = _reference_data_embedding(params, x, None, freq=freq)
    err2 = float(jnp.max(jnp.abs(out2 - ref2)))
    assert jnp.allclose(out2, ref2, atol=1e-4, rtol=1e-4), f"no-mark mismatch: {err2}"

    print("KERNEL_OK")
</pallas_src>

<mosaic_0001>
module attributes {stable_mosaic.version = 11 : i64} {
  func.func @_data_embedding_kernel(%arg0: i32, %arg1: i32, %arg2: memref<1x16x7xf32, #tpu.memory_space<vmem>>, %arg3: memref<1x1x2x7xf32, #tpu.memory_space<vmem>>, %arg4: memref<1x16x1xi32, #tpu.memory_space<vmem>>, %arg5: memref<3x7x128xf32, #tpu.memory_space<vmem>>, %arg6: memref<128x128xf32, #tpu.memory_space<vmem>>, %arg7: memref<1x128xf32, #tpu.memory_space<vmem>>, %arg8: memref<1x128xf32, #tpu.memory_space<vmem>>, %arg9: memref<1x16x128xf32, #tpu.memory_space<vmem>>) attributes {dimension_semantics = [#tpu.dimension_semantics<parallel>, #tpu.dimension_semantics<parallel>], iteration_bounds = array<i64: 2, 1>, scalar_prefetch = 0 : i64, scratch_operands = 0 : i64, tpu.core_type = #tpu.core_type<tc>, window_params = [{transform_indices = @transform_0, window_bounds = array<i64: 1, 16, 7>}, {transform_indices = @transform_1, window_bounds = array<i64: 1, 1, 2, 7>}, {transform_indices = @transform_2, window_bounds = array<i64: 1, 16, 1>}, {pipeline_mode = #tpu.pipeline_mode<synchronous>, transform_indices = @transform_3, window_bounds = array<i64: 3, 7, 128>}, {pipeline_mode = #tpu.pipeline_mode<synchronous>, transform_indices = @transform_4, window_bounds = array<i64: 128, 128>}, {pipeline_mode = #tpu.pipeline_mode<synchronous>, transform_indices = @transform_5, window_bounds = array<i64: 1, 128>}, {pipeline_mode = #tpu.pipeline_mode<synchronous>, transform_indices = @transform_6, window_bounds = array<i64: 1, 128>}, {transform_indices = @transform_7, window_bounds = array<i64: 1, 16, 128>}]} {
    %c16_i32 = arith.constant 16 : i32
    %0 = arith.muli %arg1, %c16_i32 : i32
    %c0 = arith.constant 0 : index
    %c0_0 = arith.constant 0 : index
    %c0_1 = arith.constant 0 : index
    %1 = vector.load %arg2[%c0, %c0_0, %c0_1] : memref<1x16x7xf32, #tpu.memory_space<vmem>>, vector<1x16x7xf32>
    %2 = vector.shape_cast %1 : vector<1x16x7xf32> to vector<16x7xf32>
    %c0_2 = arith.constant 0 : index
    %c0_3 = arith.constant 0 : index
    %c0_4 = arith.constant 0 : index
    %c0_5 = arith.constant 0 : index
    %3 = vector.load %arg3[%c0_2, %c0_3, %c0_4, %c0_5] : memref<1x1x2x7xf32, #tpu.memory_space<vmem>>, vector<1x1x2x7xf32>
    %4 = vector.shape_cast %3 : vector<1x1x2x7xf32> to vector<2x7xf32>
    %5 = tpu.iota {dimensions = array<i32: 0>} : vector<16x7xi32>
    %c0_i32 = arith.constant 0 : i32
    %6 = vector.broadcast %c0_i32 : i32 to vector<16x7xi32>
    %7 = arith.cmpi eq, %5, %6 : vector<16x7xi32>
    %8 = vector.extract_strided_slice %4 {offsets = [0, 0], sizes = [1, 7], strides = [1, 1]} : vector<2x7xf32> to vector<1x7xf32>
    %c1_i32 = arith.constant 1 : i32
    %9 = tpu.dynamic_rotate %2 by %c1_i32 dim 0 : vector<16x7xf32>, i32 -> vector<16x7xf32>
    %10 = vector.shape_cast %8 : vector<1x7xf32> to vector<1x7xf32>
    %11 = vector.broadcast %10 : vector<1x7xf32> to vector<16x7xf32>
    %12 = arith.select %7, %11, %9 : vector<16x7xi1>, vector<16x7xf32>
    %c16_i32_6 = arith.constant 16 : i32
    %13 = arith.subi %c16_i32_6, %0 : i32
    %c16_i32_7 = arith.constant 16 : i32
    %14 = arith.minsi %c16_i32_7, %13 : i32
    %c1_i32_8 = arith.constant 1 : i32
    %15 = arith.subi %14, %c1_i32_8 : i32
    %16 = vector.broadcast %15 : i32 to vector<16x7xi32>
    %17 = arith.cmpi eq, %5, %16 : vector<16x7xi32>
    %18 = vector.extract_strided_slice %4 {offsets = [1, 0], sizes = [1, 7], strides = [1, 1]} : vector<2x7xf32> to vector<1x7xf32>
    %c15_i32 = arith.constant 15 : i32
    %19 = tpu.dynamic_rotate %2 by %c15_i32 dim 0 : vector<16x7xf32>, i32 -> vector<16x7xf32>
    %20 = vector.shape_cast %18 : vector<1x7xf32> to vector<1x7xf32>
    %21 = vector.broadcast %20 : vector<1x7xf32> to vector<16x7xf32>
    %22 = arith.select %17, %21, %19 : vector<16x7xi1>, vector<16x7xf32>
    %c1 = arith.constant 1 : index
    %c0_9 = arith.constant 0 : index
    %c0_10 = arith.constant 0 : index
    %23 = vector.load %arg5[%c1, %c0_9, %c0_10] : memref<3x7x128xf32, #tpu.memory_space<vmem>>, vector<1x7x128xf32>
    %24 = vector.shape_cast %23 : vector<1x7x128xf32> to vector<7x128xf32>
    %cst = arith.constant dense<0.000000e+00> : vector<16x128xf32>
    %25 = tpu.matmul %2, %24, %cst {dimension_numbers = #tpu.dot_dimension_numbers<[1], [0], [0], [1], [0, 0, 1, 1], [], []>} : vector<16x7xf32>, vector<7x128xf32>, vector<16x128xf32> -> vector<16x128xf32>
    %c0_11 = arith.constant 0 : index
    %c0_12 = arith.constant 0 : index
    %c0_13 = arith.constant 0 : index
    %26 = vector.load %arg5[%c0_11, %c0_12, %c0_13] : memref<3x7x128xf32, #tpu.memory_space<vmem>>, vector<1x7x128xf32>
    %27 = vector.shape_cast %26 : vector<1x7x128xf32> to vector<7x128xf32>
    %cst_14 = arith.constant dense<0.000000e+00> : vector<16x128xf32>
    %28 = tpu.matmul %12, %27, %cst_14 {dimension_numbers = #tpu.dot_dimension_numbers<[1], [0], [0], [1], [0, 0, 1, 1], [], []>} : vector<16x7xf32>, vector<7x128xf32>, vector<16x128xf32> -> vector<16x128xf32>
    %29 = arith.addf %25, %28 : vector<16x128xf32>
    %c2 = arith.constant 2 : index
    %c0_15 = arith.constant 0 : index
    %c0_16 = arith.constant 0 : index
    %30 = vector.load %arg5[%c2, %c0_15, %c0_16] : memref<3x7x128xf32, #tpu.memory_space<vmem>>, vector<1x7x128xf32>
    %31 = vector.shape_cast %30 : vector<1x7x128xf32> to vector<7x128xf32>
    %cst_17 = arith.constant dense<0.000000e+00> : vector<16x128xf32>
    %32 = tpu.matmul %22, %31, %cst_17 {dimension_numbers = #tpu.dot_dimension_numbers<[1], [0], [0], [1], [0, 0, 1, 1], [], []>} : vector<16x7xf32>, vector<7x128xf32>, vector<16x128xf32> -> vector<16x128xf32>
    %33 = arith.addf %29, %32 : vector<16x128xf32>
    %c0_18 = arith.constant 0 : index
    %c0_19 = arith.constant 0 : index
    %34 = vector.load %arg7[%c0_18, %c0_19] : memref<1x128xf32, #tpu.memory_space<vmem>>, vector<1x128xf32>
    %35 = arith.sitofp %0 : i32 to f32
    %36 = vector.broadcast %35 : f32 to vector<1x128xf32>
    %37 = arith.mulf %36, %34 : vector<1x128xf32>
    %c0_20 = arith.constant 0 : index
    %c0_21 = arith.constant 0 : index
    %38 = vector.load %arg8[%c0_20, %c0_21] : memref<1x128xf32, #tpu.memory_space<vmem>>, vector<1x128xf32>
    %39 = arith.addf %37, %38 : vector<1x128xf32>
    %40 = tpu.iota {dimensions = array<i32: 0>} : vector<16x128xi32>
    %41 = arith.sitofp %40 : vector<16x128xi32> to vector<16x128xf32>
    %42 = vector.broadcast %34 : vector<1x128xf32> to vector<16x128xf32>
    %43 = arith.mulf %41, %42 : vector<16x128xf32>
    %44 = vector.broadcast %39 : vector<1x128xf32> to vector<16x128xf32>
    %45 = arith.addf %43, %44 : vector<16x128xf32>
    %46 = math.sin %45 : vector<16x128xf32>
    %47 = arith.addf %33, %46 : vector<16x128xf32>
    %c0_22 = arith.constant 0 : index
    %c0_23 = arith.constant 0 : index
    %c0_24 = arith.constant 0 : index
    %48 = vector.load %arg4[%c0_22, %c0_23, %c0_24] : memref<1x16x1xi32, #tpu.memory_space<vmem>>, vector<1x16x1xi32>
    %49 = vector.shape_cast %48 : vector<1x16x1xi32> to vector<16x1xi32>
    %50 = tpu.iota {dimensions = array<i32: 1>} : vector<16x128xi32>
    %c0_i32_25 = arith.constant 0 : i32
    %51 = vector.broadcast %c0_i32_25 : i32 to vector<16x1xi32>
    %52 = arith.shrsi %49, %51 : vector<16x1xi32>
    %c15_i32_26 = arith.constant 15 : i32
    %53 = vector.broadcast %c15_i32_26 : i32 to vector<16x1xi32>
    %54 = arith.andi %52, %53 : vector<16x1xi32>
    %c0_i32_27 = arith.constant 0 : i32
    %55 = vector.broadcast %c0_i32_27 : i32 to vector<16x1xi32>
    %56 = arith.addi %54, %55 : vector<16x1xi32>
    %57 = vector.broadcast %56 : vector<16x1xi32> to vector<16x128xi32>
    %58 = arith.cmpi eq, %50, %57 : vector<16x128xi32>
    %c4_i32 = arith.constant 4 : i32
    %59 = vector.broadcast %c4_i32 : i32 to vector<16x1xi32>
    %60 = arith.shrsi %49, %59 : vector<16x1xi32>
    %c31_i32 = arith.constant 31 : i32
    %61 = vector.broadcast %c31_i32 : i32 to vector<16x1xi32>
    %62 = arith.andi %60, %61 : vector<16x1xi32>
    %c13_i32 = arith.constant 13 : i32
    %63 = vector.broadcast %c13_i32 : i32 to vector<16x1xi32>
    %64 = arith.addi %62, %63 : vector<16x1xi32>
    %65 = vector.broadcast %64 : vector<16x1xi32> to vector<16x128xi32>
    %66 = arith.cmpi eq, %50, %65 : vector<16x128xi32>
    %67 = arith.ori %58, %66 : vector<16x128xi1>
    %c9_i32 = arith.constant 9 : i32
    %68 = vector.broadcast %c9_i32 : i32 to vector<16x1xi32>
    %69 = arith.shrsi %49, %68 : vector<16x1xi32>
    %c7_i32 = arith.constant 7 : i32
    %70 = vector.broadcast %c7_i32 : i32 to vector<16x1xi32>
    %71 = arith.andi %69, %70 : vector<16x1xi32>
    %c45_i32 = arith.constant 45 : i32
    %72 = vector.broadcast %c45_i32 : i32 to vector<16x1xi32>
    %73 = arith.addi %71, %72 : vector<16x1xi32>
    %74 = vector.broadcast %73 : vector<16x1xi32> to vector<16x128xi32>
    %75 = arith.cmpi eq, %50, %74 : vector<16x128xi32>
    %76 = arith.ori %67, %75 : vector<16x128xi1>
    %c12_i32 = arith.constant 12 : i32
    %77 = vector.broadcast %c12_i32 : i32 to vector<16x1xi32>
    %78 = arith.shrsi %49, %77 : vector<16x1xi32>
    %c31_i32_28 = arith.constant 31 : i32
    %79 = vector.broadcast %c31_i32_28 : i32 to vector<16x1xi32>
    %80 = arith.andi %78, %79 : vector<16x1xi32>
    %c52_i32 = arith.constant 52 : i32
    %81 = vector.broadcast %c52_i32 : i32 to vector<16x1xi32>
    %82 = arith.addi %80, %81 : vector<16x1xi32>
    %83 = vector.broadcast %82 : vector<16x1xi32> to vector<16x128xi32>
    %84 = arith.cmpi eq, %50, %83 : vector<16x128xi32>
    %85 = arith.ori %76, %84 : vector<16x128xi1>
    %86 = arith.extui %85 : vector<16x128xi1> to vector<16x128xi32>
    %87 = arith.sitofp %86 : vector<16x128xi32> to vector<16x128xf32>
    %c0_29 = arith.constant 0 : index
    %c0_30 = arith.constant 0 : index
    %88 = vector.load %arg6[%c0_29, %c0_30] : memref<128x128xf32, #tpu.memory_space<vmem>>, vector<128x128xf32>
    %cst_31 = arith.constant dense<0.000000e+00> : vector<16x128xf32>
    %89 = tpu.matmul %87, %88, %cst_31 {dimension_numbers = #tpu.dot_dimension_numbers<[1], [0], [0], [1], [0, 0, 1, 1], [], []>} : vector<16x128xf32>, vector<128x128xf32>, vector<16x128xf32> -> vector<16x128xf32>
    %90 = arith.addf %47, %89 : vector<16x128xf32>
    %c0_32 = arith.constant 0 : index
    %c0_33 = arith.constant 0 : index
    %c0_34 = arith.constant 0 : index
    %91 = vector.load %arg9[%c0_32, %c0_33, %c0_34] : memref<1x16x128xf32, #tpu.memory_space<vmem>>, vector<1x16x128xf32>
    %92 = vector.shape_cast %91 : vector<1x16x128xf32> to vector<16x128xf32>
    %93 = vector.shape_cast %90 : vector<16x128xf32> to vector<1x16x128xf32>
    tpu.vector_store %arg9[%c0_32, %c0_33, %c0_34], %93 {strides = array<i32>} : memref<1x16x128xf32, #tpu.memory_space<vmem>>, vector<1x16x128xf32>,
    return
  }
  func.func @transform_0(%arg0: i32, %arg1: i32) -> (i32, i32, i32) {
    %c0_i32 = arith.constant 0 : i32
    %c0_i32_0 = arith.constant 0 : i32
    return %arg0, %arg1, %c0_i32 : i32, i32, i32
  }
  func.func @transform_1(%arg0: i32, %arg1: i32) -> (i32, i32, i32, i32) {
    %c0_i32 = arith.constant 0 : i32
    %c0_i32_0 = arith.constant 0 : i32
    %c0_i32_1 = arith.constant 0 : i32
    return %arg0, %arg1, %c0_i32, %c0_i32_0 : i32, i32, i32, i32
  }
  func.func @transform_2(%arg0: i32, %arg1: i32) -> (i32, i32, i32) {
    %c0_i32 = arith.constant 0 : i32
    %c0_i32_0 = arith.constant 0 : i32
    return %arg0, %arg1, %c0_i32 : i32, i32, i32
  }
  func.func @transform_3(%arg0: i32, %arg1: i32) -> (i32, i32, i32) {
    %c0_i32 = arith.constant 0 : i32
    %c0_i32_0 = arith.constant 0 : i32
    %c0_i32_1 = arith.constant 0 : i32
    %c0_i32_2 = arith.constant 0 : i32
    return %c0_i32, %c0_i32_0, %c0_i32_1 : i32, i32, i32
  }
  func.func @transform_4(%arg0: i32, %arg1: i32) -> (i32, i32) {
    %c0_i32 = arith.constant 0 : i32
    %c0_i32_0 = arith.constant 0 : i32
    %c0_i32_1 = arith.constant 0 : i32
    return %c0_i32, %c0_i32_0 : i32, i32
  }
  func.func @transform_5(%arg0: i32, %arg1: i32) -> (i32, i32) {
    %c0_i32 = arith.constant 0 : i32
    %c0_i32_0 = arith.constant 0 : i32
    %c0_i32_1 = arith.constant 0 : i32
    return %c0_i32, %c0_i32_0 : i32, i32
  }
  func.func @transform_6(%arg0: i32, %arg1: i32) -> (i32, i32) {
    %c0_i32 = arith.constant 0 : i32
    %c0_i32_0 = arith.constant 0 : i32
    %c0_i32_1 = arith.constant 0 : i32
    return %c0_i32, %c0_i32_0 : i32, i32
  }
  func.func @transform_7(%arg0: i32, %arg1: i32) -> (i32, i32, i32) {
    %c0_i32 = arith.constant 0 : i32
    %c0_i32_0 = arith.constant 0 : i32
    return %arg0, %arg1, %c0_i32 : i32, i32, i32
  }
}

</mosaic_0001>

<bundles_post_ra>
// kernel: tpu_custom_call.1
= control target key start
LH: loop header
LB: loop body
LE: loop exit
PB: predicated region body
PF: predicated region fallthrough
CT: control target
= control target key end

     0   :  { %12 = vsyncpa [#allocation3], 0  ;;  %s1802_s0 = inlined_call_operand.vmem [shape: f32[2,16,7], index: 0, kind: input, shape index: {}]   ;;  %s1803_s1 = inlined_call_operand.vmem [shape: f32[2,1,2,7], index: 1, kind: input, shape index: {}]   ;;  %s1804_s2 = inlined_call_operand.vmem [shape: s32[2,16,1], index: 2, kind: input, shape index: {}]   ;;  %s1805_s3 = inlined_call_operand.vmem [shape: f32[3,7,128], index: 3, kind: input, shape index: {}]   ;;  %s1806_s4 = inlined_call_operand.hbm [shape: f32[128,128], index: 4, kind: input, shape index: {}]   ;;  %s1807_s5 = inlined_call_operand.vmem [shape: f32[1,128], index: 5, kind: input, shape index: {}]   ;;  %s1808_s6 = inlined_call_operand.vmem [shape: f32[1,128], index: 6, kind: input, shape index: {}]   ;;  %s1809_s7 = inlined_call_operand.hbm [shape: f32[2,16,128], index: 7, kind: output, shape index: {}]  }
   0x1   :  { %13 = vsyncpa [#allocation4], 0 }
   0x2   :  { %15 = vsyncpa [#allocation4 + $0x1], 0  ;;  %s1414_s24 = smov 0   ;;  %s1416_s25 = smov 0  }
   0x3   :  { %s1418_s26 = smov 0   ;;  %s1420_s27 = smov 0  }
   0x4   :  { %s1422_s28 = smov 0   ;;  %s1424_s29 = smov 0  }
   0x5 LB: > { %s1107_s30 = sadd.s32 4294967295, %s1359_s29   ;;  %s1108_s8 = sadd.s32 4294967294, %s1359_s29   ;;  %s1359_s29 = sphi %s1424_s29, %s21_s29   ;;  %s1355_s28 = sphi %s1422_s28, %s1820_s28   ;;  %s1351_s27 = sphi %s1420_s27, %s1819_s27   ;;  %s1347_s26 = sphi %s1418_s26, %s1818_s26   ;;  %s1343_s25 = sphi %s1416_s25, %s1817_s25   ;;  %s1339_s24 = sphi %s1414_s24, %s1816_s24  }
   0x6   : > { %s33_s9 = sadd.s32 1, %s1355_s28  ;;  %s210_s10 = sadd.s32 1, %s1347_s26 }
   0x7   : > { %p35_p0 = scmp.ge.s32.totalorder %s33_s9, 2  ;;  %p220_p1 = scmp.ne.s32.totalorder %s1347_s26, %s1343_s25 }
   0x8   : > { %p221_p2 = scmp.eq.s32.totalorder %s1107_s30, 1  ;;  %p226_p3 = scmp.ne.s32.totalorder %s1343_s25, %s1339_s24 }
   0x9   : > { %s1822_s9 = smov (%p35_p0, %s33_s9), 0  ;;  %p227_p5 = scmp.eq.s32.totalorder %s1108_s8, 1 }
   0xa   : > { %p1454_p4 = por %p221_p2, %p220_p1  ;;  %s205_s12 = ssub.s32 %s1355_s28, %s1822_s9 }
   0xb   : > { %p1109_p6 = scmp.ge.s32.totalorder %s1359_s29, 1  ;;  %p208_p7 = scmp.eq.s32.totalorder %s205_s12, 0 }
   0xc   : > { %p1461_p8 = por %p227_p5, %p226_p3  ;;  %p234_p9 = scmp.lt.s32.totalorder %s1359_s29, 3 }
   0xd   : > { %s1467_s14 = scalar_select %p208_p7, %s1347_s26, %s210_s10  }
   0xe   : > { %p235_p10 = pnand %p1109_p6, %p234_p9  ;;  %p1179_p11 = scmp.eq.s32.totalorder %s1107_s30, 0 }
   0xf   : > { %s248_s17 = sshll.u32 %s1806_s4, 4  ;;  %s1361_s18 = smov [#allocation2]   ;;  %s249_s17 = int_to_ptr.hbm [resolvable:$true] %s248_s17 }
  0x10   : > { %p1171_p12 = pneg %p235_p10  ;;  %s250_s19 = sshll.u32 %s1361_s18, 4  ;;  %s251_s19 = int_to_ptr.vmem [resolvable:$true] %s250_s19 }
  0x11   : > { %s1362_s20 = smov 128   ;;  %s1363_s21 = smov 8  }
  0x12   : > { %p1172_p13 = pnand %p1179_p11, %p1171_p12  ;;  %308 = sbr.rel (%p235_p10) target bundleno = 302 (0x12e), region = 48 }
  0x14   : > { %1174 = dma.hbm_to_vmem [thread:$0]  (!%p1172_p13), %s249_s17, 2048, %s251_s19, [#allocation3], %s1362_s20, %s1362_s20, %s1363_s21  }
  0x17   : > { %1330 = dma.done.wait (%p1179_p11), [#allocation3], 2048  }
  0x18   : > { %1332 = vsyncadd (%p1179_p11), [#allocation3], 4294965248  ;;  %p362_p0 = scmp.lt.s32.totalorder %s1351_s27, 1  ;;  %v1364_v0 = vmov 0   ;;  %v393_v1 = vlaneseq  ;;  %vm431_vm0 = vcmask 1046528   ;;  %v937_v10 = vld [vmem:[#allocation2 + $0x78] sm:$0xff] }
  0x19   : > { %1243 = vset.pattern.permute.xlu0 %v1364_v0  ;;  %1245 = vset.pattern.permute.xlu1 %v1364_v0  ;;  %v423_v14 = vld [vmem:[%s1805_s3] sm:$0x7f]  ;;  %v936_v21 = vld [vmem:[#allocation2 + $0x70] sm:$0xff]  ;;  %v935_v22 = vld [vmem:[#allocation2 + $0x68] sm:$0xff]  ;;  %vm424_vm3 = vcmask 56320  }
  0x1a   : > { %s363_s22 = scalar_select %p362_p0, %s1351_s27, 1  ;;  %1244 = vset.pattern.permute.xlu2 %v1364_v0  ;;  %v1484_v2 = vshrl.u32 %v393_v1, 7  ;;  %1149 = vmatpush.msra.mxu3 %v937_v10  ;;  %v1127_v25 = vld [vmem:[%s1805_s3 + $0x10] sm:$0x7f]  ;;  %v934_v29 = vld [vmem:[#allocation2 + $0x60] sm:$0xff]  ;;  %v933_v36 = vld [vmem:[#allocation2 + $0x58] sm:$0xff] }
  0x1b   : > { %938 = vmatpush.msra.mxu0 %v937_v10  ;;  %1121 = vmatpush.msk.msra.mxu1 %vm431_vm0, %v423_v14  ;;  %v1120_v30 = vld [vmem:[%s1805_s3 + $0x8] sm:$0x7f]  ;;  %v932_v39 = vld [vmem:[#allocation2 + $0x50] sm:$0xff]  ;;  %v930_v47 = vld [vmem:[#allocation2 + $0x40] sm:$0xff] }
  0x1c   : > { %s1146_s23 = sshll.u32 %s363_s22, 4  ;;  %s1117_s30 = sshll.u32 %s363_s22, 1  ;;  %vm400_vm1 = vcmp.lt.s32.totalorder %v1484_v2, 1  ;;  %vm396_vm2 = vcmp.eq.s32.totalorder %v1484_v2, 0  ;;  %1150 = vmatpush.msra.mxu3 %v936_v21  ;;  %1128 = vmatpush.msk.msra.mxu2 %vm431_vm0, %v1127_v25  ;;  %vm415_vm4 = vcmp.lt.s32.totalorder %v1484_v2, 7  ;;  %v395_v37 = vadd.s32 8, %v1484_v2 }
  0x1d   : > { %s369_s12 = scalar_lea.vmem %s1802_s0, %s1146_s23  ;;  %s386_s17 = scalar_lea.vmem %s1804_s2, %s1146_s23  ;;  %939 = vmatpush.msra.mxu0 %v936_v21  ;;  %1124 = vmatpush.msk.msrb.mxu1 %vm431_vm0, %v1120_v30  ;;  %v931_v44 = vld [vmem:[#allocation2 + $0x48] sm:$0xff]  ;;  %v929_v51 = vld [vmem:[#allocation2 + $0x38] sm:$0xff]  ;;  %v526_v53 = vld [vmem:[%s1807_s5] sm:$0x1]  ;;  %v532_v60 = vcvt.s32.f32 %v1484_v2 }
  0x1e   : > { %v857_v3 = vld [vmem:[%s386_s17 + $0x8] sm:$0xff]  ;;  %v1486_v4 = vld [vmem:[%s369_s12] sm:$0xff]  ;;  %s377_s20 = scalar_lea.vmem %s1803_s1, %s1117_s30  ;;  %1151 = vmatpush.msra.mxu3 %v935_v22  ;;  %vm412_vm5 = vcmp.eq.s32.totalorder %v395_v37, 15  ;;  %v529_v54 = vmul.f32 0.0, %v526_v53  ;;  %v928_v56 = vld [vmem:[#allocation2 + $0x30] sm:$0xff]  ;;  %v533_v58 = vcvt.s32.f32 %v395_v37  ;;  %s1148_s22 = sshll.u32 %s1351_s27, 4 }
  0x1f   : > { %v861_v5 = vand.u32 15, %v857_v3  ;;  %v1491_v6 = vld [vmem:[%s369_s12 + $0x8] sm:$0xff]  ;;  %v1493_v7 = vld [vmem:[%s386_s17] sm:$0xff]  ;;  %v887_v8 = vshra.s32 %v857_v3, 9  ;;  %v871_v9 = vshra.s32 %v857_v3, 4  ;;  %v903_v11 = vshra.s32 %v857_v3, 12  ;;  %940 = vmatpush.msra.mxu0 %v935_v22  ;;  %s979_s8 = scalar_lea.hbm %s1809_s7, %s1148_s22 }
  0x20   : > { %v860_v12 = vand.u32 15, %v1493_v7  ;;  %v870_v13 = vshra.s32 %v1493_v7, 4  ;;  %v392_v17 = vld [vmem:[%s377_s20] sm:$0x3]  ;;  %v398_v18 = vrot.slane %v1486_v4, 7  ;;  %v399_v20 = vrot.slane %v1491_v6, 7  ;;  %1152 = vmatpush.msra.mxu3 %v934_v29 }
  0x21   : > { %866 = vperm.xlu0 %1243, %v861_v5   ;;  %v889_v15 = vand.u32 7, %v887_v8  ;;  %v873_v16 = vand.u32 31, %v871_v9  ;;  %v403_v24 = vperm.slane %v392_v17, 0  ;;  %v905_v26 = vand.u32 31, %v903_v11  ;;  %941 = vmatpush.msra.mxu0 %v934_v29  ;;  %v530_v55 = vld [vmem:[%s1808_s6] sm:$0x1] }
  0x22   : > { %863 = vperm.xlu2 %1244, %v860_v12   ;;  %v872_v19 = vand.u32 31, %v870_v13  ;;  %v886_v27 = vshra.s32 %v1493_v7, 9  ;;  %v402_v28 = vsel %vm400_vm1, %v399_v20, %v398_v18  ;;  %v413_v33 = vrot.slane %v1486_v4, 1  ;;  %1153 = vmatpush.msra.mxu3 %v933_v36  ;;  %v927_v57 = vld [vmem:[#allocation2 + $0x28] sm:$0xff]  ;;  %v1246_v61 = vld [vmem:[%s1807_s5] ss:$0 sm:$0xff] }
  0x23   : > { %v891_v23 = vadd.s32 45, %v889_v15  ;;  %v875_v31 = vadd.s32 13, %v873_v16  ;;  %v404_v32 = vsel %vm396_vm2, %v403_v24, %v402_v28  ;;  %v414_v34 = vrot.slane %v1491_v6, 1  ;;  %942 = vmatpush.msra.mxu0 %v933_v36  ;;  %v926_v62 = vld [vmem:[#allocation2 + $0x20] sm:$0xff]  ;;  %v925_v63 = vld [vmem:[#allocation2 + $0x18] sm:$0xff]  ;;  %v923_v2 = vld [vmem:[#allocation2 + $0x8] sm:$0xff] }
  0x24   : > { %v874_v35 = vadd.s32 13, %v872_v19  ;;  %1122 = vmatmul.msk.f32.vlgmr.msra.gmra.mxu1 %vm424_vm3, %v404_v32  ;;  %v907_v40 = vadd.s32 52, %v905_v26  ;;  %v888_v41 = vand.u32 7, %v886_v27  ;;  %v902_v42 = vshra.s32 %v1493_v7, 12  ;;  %1154 = vmatpush.msra.mxu3 %v932_v39  ;;  %v922_v9 = vld [vmem:[#allocation2] sm:$0xff]  ;;  %s358_s20 = sand.u32 1, %s1343_s25  }
  0x25   : > { %896 = vperm.xlu1 %1245, %v891_v23   ;;  %v416_v38 = vsel %vm415_vm4, %v413_v33, %v414_v34  ;;  %v418_v43 = vperm.slane %v392_v17, 1  ;;  %v417_v45 = vsel %vm415_vm4, %v414_v34, %v413_v33  ;;  %v401_v46 = vsel %vm400_vm1, %v398_v18, %v399_v20  ;;  %943 = vmatpush.msra.mxu0 %v932_v39  ;;  %s1114_s21 = sshll.u32 %s358_s20, 4  ;;  %s982_s15 = sshll.u32 %s979_s8, 4  ;;  %s983_s15 = int_to_ptr.hbm [resolvable:$true] %s982_s15 }
  0x26   : > { %1129 = vmatmul.msk.f32.vlgmr.msra.gmra.mxu2 %vm424_vm3, %v416_v38  ;;  %v890_v48 = vadd.s32 45, %v888_v41  ;;  %v904_v49 = vand.u32 31, %v902_v42  ;;  %1155 = vmatpush.msra.mxu3 %v931_v44  ;;  %v531_v59 = vadd.f32 %v530_v55, %v529_v54  ;;  %v538_v3 = vmul.f32 %v1246_v61, %v533_v58  ;;  %s360_s10 = scalar_lea.vmem [#allocation5], %s1114_s21  ;;  %s966_s27 = scalar_lea.sflag [#allocation4], %s358_s20 }
  0x27   : > { %v420_v50 = vsel %vm412_vm5, %v418_v43, %v417_v45  ;;  %944 = vmatpush.msra.mxu0 %v931_v44  ;;  %v1558_v22 = vand.u32 127, %v393_v1  ;;  %v1365_v32 = vmov 683565275   ;;  %v1367_v38 = vmov 2131351028   ;;  %s980_s12 = sshll.u32 %s360_s10, 4  ;;  %s981_s12 = int_to_ptr.vmem [resolvable:$true] %s980_s12 }
  0x28   : > { %1156 = vmatpush.msra.mxu3 %v930_v47  ;;  %v906_v52 = vadd.s32 52, %v904_v49  ;;  %v540_v5 = vperm.slane %v531_v59, 0  ;;  %v1368_v42 = vmov 2102212464   ;;  %v1371_v54 = vmov 1326507024  }
  0x29   : > { %880 = vperm.xlu0 %1243, %v875_v31   ;;  %945 = vmatpush.msra.mxu0 %v930_v47  ;;  %s1291_s16 = sshra.s32 %s983_s15, 4  ;;  %s1297_s21 = scalar_lea.hbm %s1809_s7, 32  ;;  %s1292_s16 = int_to_ptr.hbm [resolvable:$true] %s1291_s16 }
  0x2a   : > { %877 = vperm.xlu2 %1244, %v874_v35   ;;  %1157 = vmatpush.msra.mxu3 %v929_v51  ;;  %v1547_v7 = vadd.f32 %v540_v5, %v538_v3  ;;  %v1366_v35 = vmov 2475754826   ;;  %s1293_s17 = scalar_lea.hbm %s1292_s16, 16  ;;  %p1298_p5 = scmp.lt.s32.totalorder %s1292_s16, %s1809_s7 }
  0x2b   : > { %946 = vmatpush.msra.mxu0 %v929_v51  ;;  %p1294_p1 = scmp.ne.s32.totalorder %s1292_s16, %s1293_s17  ;;  %p1299_p6 = scmp.lt.s32.totalorder %s1297_s21, %s1293_s17 }
  0x2c   : > { %1123 = vmatmul.msk.f32.gmra.mxu1 %vm424_vm3, %v401_v46  ;;  %1158 = vmatpush.msra.mxu3 %v928_v56  ;;  %v702_v10 = vand.u32 2139095040, %v1547_v7  ;;  %v699_v31 = vand.u32 2147483647, %v1547_v7 }
  0x2d   : > { %912 = vperm.xlu1 %1245, %v907_v40   ;;  %947 = vmatpush.msra.mxu0 %v928_v56  ;;  %p1295_p2 = pnand %p1294_p1, %p1454_p4  ;;  %p1300_p7 = por %p1299_p6, %p1298_p5 }
  0x2e   : > { %1130 = vmatmul.msk.f32.gmra.mxu2 %vm424_vm3, %v420_v50  ;;  %1159 = vmatpush.msra.mxu3 %v927_v57  ;;  %v703_v12 = vshrl.u32 %v702_v10, 23  ;;  %v706_v41 = vand.u32 8388607, %v699_v31  ;;  %v1370_v50 = vmov 1.0  }
  0x2f   : > { %948 = vmatpush.msra.mxu0 %v927_v57  ;;  %p1296_p3 = pneg %p1295_p2 }
  0x30   : > { %1160 = vmatpush.msra.mxu3 %v926_v62  ;;  %v1134_v14 = vadd.s32 4294967169, %v703_v12  ;;  %v707_v51 = vor.u32 8388608, %v706_v41 }
  0x31   : > { %893 = vperm.xlu0 %1243, %v890_v48   ;;  %949 = vmatpush.msra.mxu0 %v926_v62  ;;  %v1369_v48 = vmov 920167782   ;;  %p1301_p9 = pnand %p1300_p7, %p1296_p3 }
  0x32   : > { %1161 = vmatpush.msra.mxu3 %v925_v63  ;;  %v709_v16 = vadd.s32 1, %v1134_v14 }
  0x33   : > { %950 = vmatpush.msra.mxu0 %v925_v63 }
  0x34   : > { %1125 = vmatmul.msk.f32.vlgmr.msrb.gmra.mxu1 %vm424_vm3, %v1486_v4  ;;  %v537_v4 = vmul.f32 %v1246_v61, %v532_v60  ;;  %vm710_vm6 = vcmp.gt.s32.totalorder %v709_v16, 0 }
  0x35   : > { %909 = vperm.xlu1 %1245, %v906_v52   ;;  %v711_v20 = vsel %vm710_vm6, %v709_v16, 0 }
  0x36   : > { %v1549_v8 = vadd.f32 %v540_v5, %v537_v4  ;;  %v713_v23 = vand.u32 31, %v711_v20  ;;  %v1563_v27 = vshrl.u32 %v711_v20, 5  ;;  %v1603_v5 = vshll.u32 %v707_v51, 8 }
  0x38   : > { %v547_v11 = vand.u32 2139095040, %v1549_v8  ;;  %v714_v28 = vsub.s32 32, %v713_v23  ;;  %v544_v30 = vand.u32 2147483647, %v1549_v8  ;;  %v716_v33 = vshll.u32 %v1365_v32, %v713_v23 }
  0x39   : > { %v719_v37 = vshll.u32 %v1366_v35, %v713_v23  ;;  %v722_v40 = vshll.u32 %v1367_v38, %v713_v23  ;;  %v725_v47 = vshll.u32 %v1368_v42, %v713_v23  ;;  %v728_v53 = vshll.u32 %v1369_v48, %v713_v23 }
  0x3a   : > { %v548_v13 = vshrl.u32 %v547_v11, 23  ;;  %v717_v36 = vshrl.u32 %v1366_v35, %v714_v28  ;;  %v720_v39 = vshrl.u32 %v1367_v38, %v714_v28  ;;  %v723_v43 = vshrl.u32 %v1368_v42, %v714_v28 }
  0x3b   : > { %v726_v49 = vshrl.u32 %v1369_v48, %v714_v28  ;;  %v729_v55 = vshrl.u32 %v1371_v54, %v714_v28  ;;  %v715_v57 = vshrl.u32 %v1365_v32, %v714_v28  ;;  %vm731_vm1 = vcmp.lt.s32.totalorder %v1563_v27, 1 }
  0x3c   : > { %1126 = vmatmul.msk.f32.gmra.mxu1 %vm424_vm3, %v1491_v6  ;;  %v924_v6 = vld [vmem:[#allocation2 + $0x10] sm:$0xff]  ;;  %v1131_v15 = vadd.s32 4294967169, %v548_v13  ;;  %v718_v45 = vor.u32 %v717_v36, %v716_v33  ;;  %v721_v46 = vor.u32 %v720_v39, %v719_v37  ;;  %v724_v52 = vor.u32 %v723_v43, %v722_v40 }
  0x3d   : > { %1162 = vmatpush.msra.mxu3 %v924_v6  ;;  %951 = vmatpush.msra.mxu0 %v924_v6  ;;  %v727_v58 = vor.u32 %v726_v49, %v725_v47  ;;  %vm733_vm2 = vcmp.lt.s32.totalorder %v1563_v27, 3  ;;  %v730_v59 = vor.u32 %v729_v55, %v728_v53  ;;  %vm732_vm4 = vcmp.lt.s32.totalorder %v1563_v27, 2 }
  0x3e   : > { %v554_v17 = vadd.s32 1, %v1131_v15  ;;  %vm734_vm5 = vcmp.lt.s32.totalorder %v1563_v27, 4  ;;  %v739_v61 = vsel %vm731_vm1, %v718_v45, %v721_v46  ;;  %v743_v63 = vsel %vm731_vm1, %v721_v46, %v724_v52 }
  0x3f   : > { %1163 = vmatpush.msra.mxu3 %v923_v2  ;;  %952 = vmatpush.msra.mxu0 %v923_v2  ;;  %v736_v60 = vsel %vm734_vm5, %v724_v52, 2102212464  ;;  %v740_v62 = vsel %vm734_vm5, %v727_v58, 920167782  ;;  %v744_v4 = vsel %vm734_vm5, %v730_v59, 1326507024 }
  0x40   : > { %vm555_vm7 = vcmp.gt.s32.totalorder %v554_v17, 0  ;;  %v741_v3 = vsel %vm733_vm2, %v724_v52, %v740_v62  ;;  %v737_v10 = vsel %vm733_vm2, %v721_v46, %v736_v60  ;;  %v745_v12 = vsel %vm733_vm2, %v727_v58, %v744_v4 }
  0x41   : > { %1164 = vmatpush.msra.mxu3 %v922_v9  ;;  %953 = vmatpush.msra.mxu0 %v922_v9  ;;  %v1555_v21 = vsel %vm555_vm7, %v554_v17, 0  ;;  %v735_v9 = vsel %vm731_vm1, %v715_v57, %v718_v45  ;;  %v742_v11 = vsel %vm732_vm4, %v739_v61, %v741_v3  ;;  %v746_v13 = vsel %vm732_vm4, %v743_v63, %v745_v12 }
  0x42   : > { %v1561_v25 = vand.u32 31, %v1555_v21  ;;  %v748_v14 = vand.u32 65535, %v1603_v5  ;;  %v749_v15 = vshrl.u32 %v1603_v5, 16  ;;  %v750_v16 = vand.u32 65535, %v746_v13 }
  0x43   : > { %v751_v17 = vshrl.u32 %v746_v13, 16  ;;  %v1628_v20 = vshrl.u32 %v1555_v21, 5  ;;  %v1632_v23 = vsel %vm732_vm4, %v735_v9, %v737_v10 }
  0x44   : > { %v1571_v1 = vsub.s32 32, %v1561_v25  ;;  %v561_v44 = vshll.u32 %v1365_v32, %v1561_v25  ;;  %v754_v28 = vmul.u32 %v750_v16, %v749_v15  ;;  %v564_v21 = vshll.u32 %v1366_v35, %v1561_v25 }
  0x45   : > { %v755_v37 = vmul.u32 %v751_v17, %v749_v15  ;;  %v573_v4 = vshll.u32 %v1369_v48, %v1561_v25  ;;  %vm579_vm1 = vcmp.lt.s32.totalorder %v1628_v20, 4 }
  0x46   : > { %v562_v6 = vshrl.u32 %v1366_v35, %v1571_v1  ;;  %v758_v27 = vshll.u32 %v754_v28, 16  ;;  %v565_v40 = vshrl.u32 %v1367_v38, %v1571_v1  ;;  %v759_v47 = vshrl.u32 %v754_v28, 16 }
  0x47   : > { %v567_v35 = vshll.u32 %v1367_v38, %v1561_v25  ;;  %v568_v55 = vshrl.u32 %v1368_v42, %v1571_v1  ;;  %v570_v38 = vshll.u32 %v1368_v42, %v1561_v25  ;;  %v571_v3 = vshrl.u32 %v1369_v48, %v1571_v1 }
  0x48   : > { %v1652_v61 = vor.u32 %v565_v40, %v564_v21  ;;  %v574_v9 = vshrl.u32 %v1371_v54, %v1571_v1 }
  0x49   : > { %v572_v42 = vor.u32 %v571_v3, %v570_v38 }
  0x4a   : > { %v575_v13 = vor.u32 %v574_v9, %v573_v4 }
  0x4b   : > { %v585_v54 = vsel %vm579_vm1, %v572_v42, 920167782 }
  0x7c   : > { %v1553_v18 = vpop.permute.xlu2 %863 }
  0x7d   : > { %vm868_vm9 = vcmp.eq.s32.totalorder %v1558_v22, %v1553_v18  ;;  %v772_v18 = vand.u32 65535, %v742_v11 }
  0x7f   : > { %v774_v33 = vmul.u32 %v772_v18, %v748_v14  ;;  %v776_v36 = vmul.u32 %v772_v18, %v749_v15 }
  0x81   : > { %v780_v46 = vshll.u32 %v776_v36, 16  ;;  %v781_v57 = vshrl.u32 %v776_v36, 16 }
  0x84   : > { %v878_v26 = vpop.permute.xlu2 %877 }
  0x85   : > { %vm882_vm11 = vcmp.eq.s32.totalorder %v1558_v22, %v878_v26  ;;  %v753_v26 = vmul.u32 %v751_v17, %v748_v14 }
  0x86   : > { %vm884_vm6 = vmor %vm868_vm9, %vm882_vm11 }
  0x87   : > { %v756_v39 = vshll.u32 %v753_v26, 16  ;;  %v757_v41 = vshrl.u32 %v753_v26, 16 }
  0x93   : > { %v867_v19 = vpop.permute.xlu0 %866 }
  0x94   : > { %vm869_vm8 = vcmp.eq.s32.totalorder %v1558_v22, %v867_v19  ;;  %v773_v19 = vshrl.u32 %v742_v11, 16 }
  0x96   : > { %v777_v43 = vmul.u32 %v773_v19, %v749_v15 }
  0x97   : > { %v897_v24 = vpop.permute.xlu1 %896 }
  0x98   : > { %vm899_vm12 = vcmp.eq.s32.totalorder %v1558_v22, %v897_v24  ;;  %v752_v24 = vmul.u32 %v750_v16, %v748_v14 }
  0x9b   : > { %v881_v29 = vpop.permute.xlu0 %880 }
  0x9c   : > { %vm883_vm10 = vcmp.eq.s32.totalorder %v1558_v22, %v881_v29  ;;  %v1638_v29 = vor.u32 %v562_v6, %v561_v44  ;;  %v762_v44 = vadd.s32 %v756_v39, %v752_v24 }
  0x9d   : > { %vm885_vm13 = vmor %vm869_vm8, %vm883_vm10  ;;  %vm760_vm10 = vc.u32 %v752_v24, %v756_v39 }
  0x9e   : > { %vm901_vm14 = vmor %vm885_vm13, %vm899_vm12  ;;  %vm764_vm12 = vc.u32 %v762_v44, %v758_v27 }
  0x9f   : > { %v913_v34 = vpop.permute.xlu1 %912 }
  0xa0   : > { %vm915_vm15 = vcmp.eq.s32.totalorder %v1558_v22, %v913_v34  ;;  %v775_v34 = vmul.u32 %v773_v19, %v748_v14  ;;  %v792_v14 = vmul.u32 %v1603_v5, %v1632_v23  ;;  %v589_v19 = vsel %vm579_vm1, %v575_v13, 1326507024 }
  0xa1   : > { %vm917_vm0 = vmor %vm901_vm14, %vm915_vm15  ;;  %vm576_vm14 = vcmp.lt.s32.totalorder %v1628_v20, 1  ;;  %vm578_vm15 = vcmp.lt.s32.totalorder %v1628_v20, 3 }
  0xa2   : > { %1140 = vmatmul.msk.f32.vlgmr.msra.gmra.mxu3 %vm917_vm0, %v1370_v50  ;;  %v778_v45 = vshll.u32 %v775_v34, 16  ;;  %v779_v49 = vshrl.u32 %v775_v34, 16  ;;  %vm577_vm0 = vcmp.lt.s32.totalorder %v1628_v20, 2  ;;  %v584_v48 = vsel %vm576_vm14, %v1638_v29, %v1652_v61 }
  0xa3   : > { %v894_v56 = vpop.permute.xlu0 %893  ;;  %v590_v26 = vsel %vm578_vm15, %v572_v42, %v589_v19 }
  0xa4   : > { %vm898_vm3 = vcmp.eq.s32.totalorder %v1558_v22, %v894_v56  ;;  %vm782_vm11 = vc.u32 %v774_v33, %v778_v45  ;;  %v784_v51 = vadd.s32 %v778_v45, %v774_v33  ;;  %v765_v56 = vsel %vm764_vm12, 1, %v1364_v0 }
  0xa5   : > { %vm900_vm7 = vmor %vm884_vm6, %vm898_vm3  ;;  %v783_v53 = vsel %vm782_vm11, 1, %v1364_v0  ;;  %vm701_vm12 = vcmp.lt.s32.totalorder %v1547_v7, 0 }
  0xa6   : > { %v785_v58 = vadd.s32 %v783_v53, %v777_v43  ;;  %vm786_vm13 = vc.u32 %v784_v51, %v780_v46  ;;  %v1656_v62 = vadd.s32 %v784_v51, %v780_v46  ;;  %v560_v53 = vshrl.u32 %v1365_v32, %v1571_v1 }
  0xa7   : > { %v910_v2 = vpop.permute.xlu1 %909  ;;  %v787_v60 = vsel %vm786_vm13, 1, %v1364_v0  ;;  %vm1726_vm13 = vcmp.le.f32.partialorder %v699_v31, 0.7853982 }
  0xa8   : > { %vm914_vm8 = vcmp.eq.s32.totalorder %v1558_v22, %v910_v2  ;;  %v1636_v22 = vand.u32 8388607, %v544_v30  ;;  %v789_v63 = vadd.s32 %v787_v60, %v785_v58  ;;  %v569_v2 = vor.u32 %v568_v55, %v567_v35 }
  0xa9   : > { %vm916_vm9 = vmor %vm900_vm7, %vm914_vm8 }
  0xaa   : > { %1139 = vmatmul.msk.f32.vlgmr.msra.gmra.mxu0 %vm916_vm9, %v1370_v50  ;;  %v761_v50 = vsel %vm760_vm10, 1, %v1364_v0  ;;  %v790_v10 = vadd.s32 %v789_v63, %v779_v49  ;;  %v552_v11 = vor.u32 8388608, %v1636_v22  ;;  %v586_v15 = vsel %vm578_vm15, %v569_v2, %v585_v54 }
  0xab   : > { %v763_v52 = vadd.s32 %v761_v50, %v755_v37  ;;  %v587_v17 = vsel %vm577_vm0, %v584_v48, %v586_v15  ;;  %v588_v18 = vsel %vm576_vm14, %v1652_v61, %v569_v2  ;;  %v581_v55 = vsel %vm579_vm1, %v569_v2, 2102212464 }
  0xac   : > { %v791_v25 = vadd.s32 %v790_v10, %v781_v57  ;;  %v1690_v22 = vshll.u32 %v552_v11, 8  ;;  %v617_v5 = vand.u32 65535, %v587_v17  ;;  %v618_v23 = vshrl.u32 %v587_v17, 16 }
  0xad   : > { %v767_v59 = vadd.s32 %v765_v56, %v763_v52  ;;  %v591_v33 = vsel %vm577_vm0, %v588_v18, %v590_v26  ;;  %v580_v2 = vsel %vm576_vm14, %v560_v53, %v1638_v29  ;;  %v582_v13 = vsel %vm578_vm15, %v1652_v61, %v581_v55 }
  0xae   : > { %v795_v16 = vadd.s32 1, %v791_v25  ;;  %v593_v34 = vand.u32 65535, %v1690_v22  ;;  %v594_v36 = vshrl.u32 %v1690_v22, 16  ;;  %v595_v21 = vand.u32 65535, %v591_v33 }
  0xaf   : > { %v768_v6 = vadd.s32 %v767_v59, %v757_v41  ;;  %v596_v37 = vshrl.u32 %v591_v33, 16  ;;  %v583_v18 = vsel %vm577_vm0, %v580_v2, %v582_v13  ;;  %vm546_vm14 = vcmp.lt.s32.totalorder %v1549_v8, 0 }
  0xb0   : > { %v620_v27 = vmul.u32 %v618_v23, %v593_v34  ;;  %v621_v40 = vmul.u32 %v617_v5, %v594_v36  ;;  %v597_v41 = vmul.u32 %v595_v21, %v593_v34  ;;  %v599_v45 = vmul.u32 %v595_v21, %v594_v36 }
  0xb1   : > { %v1667_v12 = vadd.s32 %v768_v6, %v759_v47  ;;  %v598_v43 = vmul.u32 %v596_v37, %v593_v34  ;;  %v619_v46 = vmul.u32 %v617_v5, %v593_v34  ;;  %v600_v49 = vmul.u32 %v596_v37, %v594_v36 }
  0xb2   : > { %v623_v44 = vshll.u32 %v620_v27, 16  ;;  %v603_v51 = vshll.u32 %v599_v45, 16  ;;  %v622_v35 = vmul.u32 %v618_v23, %v594_v36  ;;  %v625_v56 = vshll.u32 %v621_v40, 16 }
  0xb3   : > { %vm794_vm2 = vc.u32 %v1667_v12, %v1656_v62  ;;  %v601_v50 = vshll.u32 %v598_v43, 16  ;;  %v624_v38 = vshrl.u32 %v620_v27, 16  ;;  %v602_v3 = vshrl.u32 %v598_v43, 16 }
  0xb4   : > { %v796_v24 = vsel %vm794_vm2, %v795_v16, %v791_v25  ;;  %vm627_vm4 = vc.u32 %v619_v46, %v623_v44  ;;  %v629_v58 = vadd.s32 %v623_v44, %v619_v46  ;;  %v604_v9 = vshrl.u32 %v599_v45, 16 }
  0xb5   : > { %v797_v28 = vadd.s32 %v796_v24, %v792_v14  ;;  %vm605_vm3 = vc.u32 %v597_v41, %v601_v50  ;;  %v607_v57 = vadd.s32 %v601_v50, %v597_v41  ;;  %v628_v63 = vsel %vm627_vm4, 1, %v1364_v0 }
  0xb6   : > { %v606_v60 = vsel %vm605_vm3, 1, %v1364_v0  ;;  %v630_v6 = vadd.s32 %v628_v63, %v622_v35  ;;  %vm631_vm7 = vc.u32 %v629_v58, %v625_v56  ;;  %v626_v25 = vshrl.u32 %v621_v40, 16 }
  0xb7   : > { %v798_v39 = vadd.s32 536870912, %v797_v28  ;;  %v608_v4 = vadd.s32 %v606_v60, %v600_v49  ;;  %vm609_vm5 = vc.u32 %v607_v57, %v603_v51  ;;  %v632_v11 = vsel %vm631_vm7, 1, %v1364_v0 }
  0xb8   : > { %v610_v32 = vsel %vm609_vm5, 1, %v1364_v0  ;;  %v634_v48 = vadd.s32 %v632_v11, %v630_v6  ;;  %v633_v15 = vadd.s32 %v629_v58, %v625_v56  ;;  %v637_v0 = vmul.u32 %v1690_v22, %v583_v18 }
  0xb9   : > { %v1698_v47 = vshrl.u32 %v798_v39, 30  ;;  %v612_v10 = vadd.s32 %v610_v32, %v608_v4  ;;  %v793_v34 = vadd.s32 %v1656_v62, %v1667_v12  ;;  %vm1735_vm15 = vcmp.le.f32.partialorder %v544_v30, 0.7853982 }
  0xba   : > { %v635_v16 = vadd.s32 %v634_v48, %v624_v38  ;;  %vm687_vm7 = vweird.f32 %v1549_v8 }
  0xbb   : > { %v800_v52 = vshll.u32 %v1698_v47, 30  ;;  %v613_v14 = vadd.s32 %v612_v10, %v602_v3 }
  0xbc   : > { %v636_v19 = vadd.s32 %v635_v16, %v626_v25 }
  0xbd   : > { %v801_v59 = vsub.s32 %v797_v28, %v800_v52  ;;  %v614_v29 = vadd.s32 %v613_v14, %v604_v9 }
  0xbe   : > { %v640_v5 = vadd.s32 1, %v636_v19 }
  0xbf   : > { %vm802_vm6 = vcmp.lt.s32.totalorder %v801_v59, 0  ;;  %v803_v1 = vsub.s32 0, %v801_v59  ;;  %vm639_vm9 = vc.u32 %v614_v29, %v633_v15  ;;  %v638_v49 = vadd.s32 %v633_v15, %v614_v29 }
  0xc0   : > { %v641_v23 = vsel %vm639_vm9, %v640_v5, %v636_v19  ;;  %v823_v19 = vsub.s32 4, %v1698_v47 }
  0xc1   : > { %v804_v42 = vsel %vm802_vm6, %v803_v1, %v801_v59  ;;  %v642_v61 = vadd.s32 %v641_v23, %v637_v0  ;;  %vm842_vm6 = vweird.f32 %v1547_v7 }
  0xc2   : > { %v805_v54 = vclz %v804_v42  ;;  %v452_v42 = vpop.f32.mrf.mxu1 }
  0xc3   : > { %v643_v28 = vadd.s32 536870912, %v642_v61 }
  0xc4   : > { %v1135_v17 = vadd.s32 4294967294, %v805_v54 }
  0xc5   : > { %v1718_v33 = vshrl.u32 %v643_v28, 30 }
  0xc6   : > { %vm1136_vm8 = vcmp.lt.s32.totalorder %v1135_v17, 0 }
  0xc7   : > { %v808_v24 = vsel %vm1136_vm8, 0, %v1135_v17  ;;  %v645_v21 = vshll.u32 %v1718_v33, 30  ;;  %v668_v23 = vsub.s32 4, %v1718_v33 }
  0xc8   : > { %v813_v26 = vsub.s32 4294967266, %v808_v24  ;;  %v809_v36 = vsub.s32 32, %v808_v24  ;;  %v810_v39 = vshll.u32 %v801_v59, %v808_v24 }
  0xc9   : > { %v646_v37 = vsub.s32 %v642_v61, %v645_v21 }
  0xca   : > { %v814_v20 = vadd.s32 127, %v813_v26  ;;  %v811_v27 = vshrl.u32 %v793_v34, %v809_v36  ;;  %v455_v17 = vpop.f32.mrf.mxu1  ;;  %v824_v26 = vsel %vm701_vm12, %v823_v19, %v1698_v47  ;;  %v669_v36 = vsel %vm546_vm14, %v668_v23, %v1718_v33 }
  0xcb   : > { %vm647_vm10 = vcmp.lt.s32.totalorder %v646_v37, 0  ;;  %v648_v40 = vsub.s32 0, %v646_v37 }
  0xcc   : > { %v815_v22 = vshll.u32 %v814_v20, 23  ;;  %v812_v45 = vor.u32 %v811_v27, %v810_v39  ;;  %v826_v20 = vsel %vm1726_vm13, 0, %v824_v26 }
  0xcd   : > { %v649_v41 = vsel %vm647_vm10, %v648_v40, %v646_v37  ;;  %v671_v40 = vsel %vm1735_vm15, 0, %v669_v36 }
  0xce   : > { %v650_v43 = vclz %v649_v41  ;;  %v816_v46 = vor.u32 4788187, %v815_v22  ;;  %v819_v51 = vcvt.s32.f32 %v812_v45  ;;  %v843_v41 = vadd.s32 3, %v826_v20 }
  0xcf   : > { %v688_v45 = vadd.s32 3, %v671_v40 }
  0xd0   : > { %v1132_v44 = vadd.s32 4294967294, %v650_v43  ;;  %v817_v50 = vand.u32 2147483647, %v816_v46  ;;  %v518_v46 = vpop.f32.mrf.mxu2  ;;  %v844_v33 = vand.u32 3, %v843_v41 }
  0xd2   : > { %vm1133_vm11 = vcmp.lt.s32.totalorder %v1132_v44, 0  ;;  %v820_v55 = vmul.f32 %v819_v51, %v817_v50  ;;  %v484_v39 = vpop.f32.mrf.mxu1  ;;  %vm846_vm0 = vcmp.eq.s32.totalorder %v844_v33, 0  ;;  %vm849_vm1 = vcmp.eq.s32.totalorder %v844_v33, 2 }
  0xd3   : > { %v653_v62 = vsel %vm1133_vm11, 0, %v1132_v44  ;;  %vm845_vm4 = vcmp.lt.s32.totalorder %v844_v33, 2 }
  0xd4   : > { %v654_v12 = vsub.s32 32, %v653_v62  ;;  %v655_v35 = vshll.u32 %v646_v37, %v653_v62  ;;  %v658_v52 = vsub.s32 4294967266, %v653_v62  ;;  %v821_v59 = vxor.u32 2147483648, %v820_v55 }
  0xd5   : > { %v689_v62 = vand.u32 3, %v688_v45 }
  0xd6   : > { %v656_v53 = vshrl.u32 %v638_v49, %v654_v12  ;;  %v659_v56 = vadd.s32 127, %v658_v52  ;;  %v822_v4 = vsel %vm701_vm12, %v821_v59, %v820_v55 }
  0xd7   : > { %v825_v31 = vsel %vm1726_vm13, %v1547_v7, %v822_v4  ;;  %vm691_vm2 = vcmp.eq.s32.totalorder %v689_v62, 0  ;;  %vm694_vm3 = vcmp.eq.s32.totalorder %v689_v62, 2  ;;  %vm690_vm5 = vcmp.lt.s32.totalorder %v689_v62, 2 }
  0xd8   : > { %v657_v57 = vor.u32 %v656_v53, %v655_v35  ;;  %v660_v58 = vshll.u32 %v659_v56, 23  ;;  %v827_v10 = vmul.f32 %v825_v31, %v825_v31  ;;  %v521_v59 = vpop.f32.mrf.mxu2 }
  0xda   : > { %v661_v60 = vor.u32 4788187, %v660_v58  ;;  %v664_v38 = vcvt.s32.f32 %v657_v57  ;;  %v835_v13 = vmul.f32 -0.00019511016, %v827_v10  ;;  %v828_v25 = vmul.f32 -0.001358992, %v827_v10  ;;  %v487_v52 = vpop.f32.mrf.mxu1 }
  0xdb   : > { %v488_v58 = vadd.f32 %v487_v52, %v455_v17 }
  0xdc   : > { %v662_v63 = vand.u32 2147483647, %v661_v60  ;;  %v836_v48 = vadd.f32 0.008332121, %v835_v13  ;;  %v829_v15 = vadd.f32 0.041655596, %v828_v25 }
  0xdd   : > { %v525_v4 = vadd.f32 %v521_v59, %v488_v58 }
  0xde   : > { %v665_v6 = vmul.f32 %v664_v38, %v662_v63  ;;  %v837_v16 = vmul.f32 %v836_v48, %v827_v10  ;;  %v830_v0 = vmul.f32 %v829_v15, %v827_v10  ;;  %v485_v63 = vadd.f32 %v484_v39, %v452_v42 }
  0xe0   : > { %v666_v32 = vxor.u32 2147483648, %v665_v6  ;;  %v838_v5 = vadd.f32 -0.16666654, %v837_v16  ;;  %v831_v28 = vadd.f32 -0.4999988, %v830_v0 }
  0xe2   : > { %v667_v2 = vsel %vm546_vm14, %v666_v32, %v665_v6  ;;  %v839_v34 = vmul.f32 %v838_v5, %v827_v10  ;;  %v832_v27 = vmul.f32 %v831_v28, %v827_v10  ;;  %v524_v32 = vadd.f32 %v518_v46, %v485_v63 }
  0xe3   : > { %v670_v9 = vsel %vm1735_vm15, %v1549_v8, %v667_v2 }
  0xe4   : > { %v672_v11 = vmul.f32 %v670_v9, %v670_v9  ;;  %v840_v22 = vadd.f32 1.0, %v839_v34  ;;  %v833_v44 = vadd.f32 1.0, %v832_v27 }
  0xe6   : > { %v680_v30 = vmul.f32 -0.00019511016, %v672_v11  ;;  %v673_v54 = vmul.f32 -0.001358992, %v672_v11  ;;  %v841_v49 = vmul.f32 %v840_v22, %v825_v31  ;;  %v850_v35 = vxor.u32 2147483648, %v833_v44 }
  0xe8   : > { %v681_v14 = vadd.f32 0.008332121, %v680_v30  ;;  %v674_v18 = vadd.f32 0.041655596, %v673_v54  ;;  %v847_v12 = vxor.u32 2147483648, %v841_v49  ;;  %v851_v57 = vsel %vm849_vm1, %v850_v35, %v841_v49 }
  0xea   : > { %v682_v29 = vmul.f32 %v681_v14, %v672_v11  ;;  %v675_v24 = vmul.f32 %v674_v18, %v672_v11  ;;  %v848_v56 = vsel %vm846_vm0, %v833_v44, %v847_v12 }
  0xeb   : > { %v852_v3 = vsel %vm845_vm4, %v848_v56, %v851_v57 }
  0xec   : > { %v683_v61 = vadd.f32 -0.16666654, %v682_v29  ;;  %v676_v21 = vadd.f32 -0.4999988, %v675_v24  ;;  %v853_v1 = vsel %vm842_vm6, nan, %v852_v3 }
  0xed   : > { %v855_v2 = vadd.f32 %v853_v1, %v525_v4 }
  0xee   : > { %v684_v37 = vmul.f32 %v683_v61, %v672_v11  ;;  %v677_v43 = vmul.f32 %v676_v21, %v672_v11 }
  0xf0   : > { %v685_v47 = vadd.f32 1.0, %v684_v37  ;;  %v678_v50 = vadd.f32 1.0, %v677_v43 }
  0xf2   : > { %v686_v51 = vmul.f32 %v685_v47, %v670_v9  ;;  %v695_v55 = vxor.u32 2147483648, %v678_v50 }
  0xf4   : > { %v692_v53 = vxor.u32 2147483648, %v686_v51  ;;  %v696_v38 = vsel %vm694_vm3, %v695_v55, %v686_v51 }
  0xf6   : > { %v693_v60 = vsel %vm691_vm2, %v678_v50, %v692_v53 }
  0xf7   : > { %v697_v6 = vsel %vm690_vm5, %v693_v60, %v696_v38 }
  0xf8   : > { %v698_v31 = vsel %vm687_vm7, nan, %v697_v6 }
  0xf9   : > { %v854_v10 = vadd.f32 %v698_v31, %v524_v32 }
 0x125   : > { %v958_v9 = vpop.f32.mrf.mxu3 }
 0x126   : > { %v962_v7 = vadd.f32 %v958_v9, %v855_v2 }
 0x127   : > { %v955_v11 = vpop.f32.mrf.mxu0 }
 0x128   : > { %964 = vst [vmem:[%s360_s10 + $0x8] sm:$0xff] %v962_v7  ;;  %v961_v8 = vadd.f32 %v955_v11, %v854_v10 }
 0x12a   : > { %963 = vst [vmem:[%s360_s10] sm:$0xff] %v961_v8 }
 0x12b   : > { %1304 = shalt.err (!%p1301_p9)
}
 0x12c   : > { %s1372_s20 = smov 128   ;;  %s1373_s30 = smov 8  }
 0x12d   : > { %1169 = dma.vmem_to_hbm [thread:$0]  (%p1454_p4), %s981_s12, 256, %s983_s15, %s966_s27, %s1372_s20, %s1372_s20, %s1373_s30  }
 0x12e PF: > { %p1181_p10 = scmp.ge.s32.totalorder %s1359_s29, 2  ;;  %s997_s8 = sand.u32 1, %s1339_s24  }
 0x12f   : > { %s998_s10 = scalar_lea.sflag [#allocation4], %s997_s8 }
 0x130   : > { %p1176_p11 = pnand %p1181_p10, %p1461_p8 }
 0x132   : > { %p1177_p12 = pneg %p1176_p11 }
 0x134   : > { %1334 = dma.done.wait (%p1177_p12), %s998_s10, 256  }
 0x135   : > { %1336 = vsyncadd (%p1177_p12), %s998_s10, 4294967040  ;;  %s21_s29 = sadd.s32 1, %s1359_s29   ;;  %s1816_s24 = smov %s1343_s25 }
 0x136   : > { %p18_p13 = scmp.ge.s32.totalorder %s21_s29, 4   ;;  %s1817_s25 = smov %s1347_s26 }
 0x137   : > { %s1818_s26 = smov %s1467_s14  ;;  %s1819_s27 = smov %s1355_s28 }
 0x138   : > { %s1820_s28 = smov %s1822_s9  ;;  %20 = sbr.rel (!%p18_p13) target bundleno = 5 (0x5), region = 96 }
 0x13d   :  { %1004 = vsyncpa [#allocation3], 1 }
 0x13e   :  { %1006 = vsyncpa [#allocation3 + $0x1], 1 }
 0x13f   :  { %1007 = vsyncpa [#allocation4], 1 }
 0x140   :  { %1009 = vsyncpa [#allocation4 + $0x1], 1 }

</bundles_post_ra>
